<compile_context>
chip_gen: v6e
topology: v6e:2x2x1
jax: 0.10.0
libtpu: 0.0.40
codegen_flags: <defaults>
</compile_context>

<pallas_src>
import functools

import jax
import jax.numpy as jnp
from jax import lax
from jax.experimental import pallas as pl
from jax.experimental.pallas import tpu as pltpu

LANE = 128
NEG = -1e30  # fill for padded logit lanes (exp() -> 0 in the softmax sum); f32 only


def _round_up(n, m):
    return ((n + m - 1) // m) * m


def rnn_chunk_kernel(x_ref, h0_ref, wx_ref, wh_ref, b_ref,
                     out_ref, hn_ref, h_scr, zx_scr, *, t_valid, t_chunk):
    """Runs `t_chunk` timesteps of the fused RNN cell per grid step.

    x_ref  : [Tc, B, I]    f32   chunk of inputs (cast to bf16 in-kernel)
    h0_ref : [B, Hp]       f32   initial hidden (padded), VMEM-resident
    wx_ref : [I,  Hp+Op]   bf16  fused (i2h | i2o) weights, input rows
    wh_ref : [Hp, Hp+Op]   bf16  fused (i2h | i2o) weights, hidden rows (padded)
    b_ref  : [1,  Hp+Op]   f32   fused bias (padded logit lanes = -1e30)
    out_ref: [Tc, B, Op]   f32   per-step log-softmax output
    hn_ref : [B, Hp]       f32   final hidden (written at last grid step)
    h_scr  : [B, Hp]       f32   VMEM hidden-state accumulator
    zx_scr : [Tc, B, Hp+Op] f32  hoisted input projection (+bias) for the chunk
    """
    c = pl.program_id(0)
    tc, bsz, _ = x_ref.shape
    hp = h_scr.shape[1]
    npad = zx_scr.shape[2]

    @pl.when(c == 0)
    def _init():
        h_scr[...] = h0_ref[...]

    # (1) Batched input projection for the whole chunk: one tall MXU pass.
    xb = x_ref[...].astype(jnp.bfloat16).reshape(tc * bsz, -1)
    zx = jnp.dot(xb, wx_ref[...], preferred_element_type=jnp.float32)
    zx_scr[...] = zx.reshape(tc, bsz, npad) + b_ref[...]   # bias folded in (f32)

    # (2) Serial recurrence: a single h @ wh MXU push per step on the
    #     critical path; softmax runs on EUP/XLU and overlaps the next push.
    def step(t, h):
        hb = h.astype(jnp.bfloat16)
        z = zx_scr[t] + jnp.dot(hb, wh_ref[...],
                                preferred_element_type=jnp.float32)
        hid = z[:, :hp]            # lane-aligned slice (Hp multiple of 128)
        logits = z[:, hp:]

        # Numerically stable log-softmax (f32).  Padded logit lanes have bias
        # -1e30 -> exp(shifted) == 0, so they never pollute the LSE.
        m = jnp.max(logits, axis=-1, keepdims=True)
        shifted = logits - m
        lse = jnp.log(jnp.sum(jnp.exp(shifted), axis=-1, keepdims=True))
        out_ref[t] = (shifted - lse).astype(out_ref.dtype)

        if t_valid % t_chunk != 0:
            # Padded tail timesteps must not advance the recurrence.
            gt = c * t_chunk + t
            hid = jnp.where(gt < t_valid, hid, h)
        return hid

    h_scr[...] = lax.fori_loop(0, tc, step, h_scr[...], unroll=True)

    @pl.when(c == pl.num_programs(0) - 1)
    def _finalize():
        hn_ref[...] = h_scr[...]


def pack_params(wh_t, bh, wo_t, bo, input_size, hidden_size, output_size):
    """Fuse + pad PyTorch-shaped params into MXU-friendly lane-dense blocks.

    wh_t: [I+H, H], bh: [1, H], wo_t: [I+H, O], bo: [1, O]  (weights already
    stored transposed relative to nn.Linear).
    Returns (wx [I,Hp+Op] bf16, wh [Hp,Hp+Op] bf16, b [1,Hp+Op] f32).
    """
    hp = _round_up(hidden_size, LANE)
    op = _round_up(output_size, LANE)
    kin = input_size + hidden_size

    w_cat = jnp.zeros((kin, hp + op), jnp.float32)
    w_cat = w_cat.at[:, :hidden_size].set(wh_t)
    w_cat = w_cat.at[:, hp:hp + output_size].set(wo_t)

    wx = w_cat[:input_size].astype(jnp.bfloat16)              # [I, Hp+Op]
    wh = jnp.zeros((hp, hp + op), jnp.float32)                 # padded h rows = 0
    wh = wh.at[:hidden_size].set(w_cat[input_size:])
    wh = wh.astype(jnp.bfloat16)                               # [Hp, Hp+Op]

    b = jnp.full((1, hp + op), NEG, jnp.float32)               # padded logits
    b = b.at[:, :hp].set(0.0)                                  # padded hidden = 0
    b = b.at[:, :hidden_size].set(bh)
    b = b.at[:, hp:hp + output_size].set(bo)
    return wx, wh, b


def _vmem_bytes_estimate(tc, bsz, isz, hp, npad, op):
    weights = (isz * npad + hp * npad) * 2 * 2         # bf16, double-buffered
    bias = npad * 4 * 2
    x_chunk = tc * bsz * isz * 4 * 2
    out_chunk = tc * bsz * op * 4 * 2
    h_io = bsz * hp * 4 * 2 * 2                        # h0 in + hn out
    scratch = bsz * hp * 4 + tc * bsz * npad * 4
    return weights + bias + x_chunk + out_chunk + h_io + scratch


@functools.partial(jax.jit,
                   static_argnames=("hidden_size", "output_size", "chunk"))
def rnn_sequence(xs, h0, wx, wh, b, *, hidden_size, output_size, chunk=8):
    """Run the RNN cell over a whole sequence in one pallas_call.

    xs: [T, B, I] f32, h0: [B, H] f32.
    Returns (log-softmax outputs [T, B, O], final hidden [B, H]).
    """
    T, B, I = xs.shape
    hp, npad = wh.shape
    op = npad - hp

    tc = max(1, min(chunk, T))
    t_pad = _round_up(T, tc)
    if t_pad != T:
        xs = jnp.concatenate(
            [xs, jnp.zeros((t_pad - T, B, I), xs.dtype)], axis=0)
    n_chunks = t_pad // tc

    h0p = jnp.zeros((B, hp), jnp.float32).at[:, :hidden_size].set(h0)

    cost = pl.CostEstimate(
        flops=2 * t_pad * B * (I + hp) * npad,
        transcendentals=t_pad * B * op,
        bytes_accessed=(t_pad * B * I * 4 + (I + hp) * npad * 2 + npad * 4
                        + t_pad * B * op * 4 + 2 * B * hp * 4),
    )

    # Scoped-VMEM limit sized from the actual footprint (kept modest so it is
    # valid on every generation; v7x per-TC physical VMEM is 64 MiB).
    vmem_bytes = min(max(2 * _vmem_bytes_estimate(tc, B, I, hp, npad, op),
                         32 * 1024 * 1024), 64 * 1024 * 1024)

    kernel = functools.partial(rnn_chunk_kernel, t_valid=T, t_chunk=tc)

    out_p, hn_p = pl.pallas_call(
        kernel,
        out_shape=(
            jax.ShapeDtypeStruct((t_pad, B, op), jnp.float32),
            jax.ShapeDtypeStruct((B, hp), jnp.float32),
        ),
        grid_spec=pltpu.PrefetchScalarGridSpec(
            num_scalar_prefetch=0,
            grid=(n_chunks,),
            in_specs=[
                pl.BlockSpec((tc, B, I), lambda c: (c, 0, 0)),   # x chunk
                pl.BlockSpec((B, hp), lambda c: (0, 0)),         # h0 (resident)
                pl.BlockSpec((I, npad), lambda c: (0, 0)),       # wx (resident)
                pl.BlockSpec((hp, npad), lambda c: (0, 0)),      # wh (resident)
                pl.BlockSpec((1, npad), lambda c: (0, 0)),       # bias (resident)
            ],
            out_specs=(
                pl.BlockSpec((tc, B, op), lambda c: (c, 0, 0)),  # per-step out
                pl.BlockSpec((B, hp), lambda c: (0, 0)),         # final hidden
            ),
            scratch_shapes=[
                pltpu.VMEM((B, hp), jnp.float32),          # hidden accumulator
                pltpu.VMEM((tc, B, npad), jnp.float32),    # hoisted x-projection
            ],
        ),
        compiler_params=pltpu.CompilerParams(
            dimension_semantics=("arbitrary",),   # time chunks are serial
            vmem_limit_bytes=int(vmem_bytes)),
        cost_estimate=cost,
    )(xs, h0p, wx, wh, b)

    return out_p[:T, :, :output_size], hn_p[:, :hidden_size]


def rnn_step(x, h, wx, wh, b, *, hidden_size, output_size):
    """Exact nn.Module.forward semantics: one step -> (output, hidden)."""
    out, hn = rnn_sequence(x[None], h, wx, wh, b,
                           hidden_size=hidden_size, output_size=output_size)
    return out[0], hn


def init_params(key, input_size, hidden_size, output_size):
    """nn.Linear-style init; weights stored transposed ([in, out])."""
    kin = input_size + hidden_size
    k1, k2, k3, k4 = jax.random.split(key, 4)
    bound = 1.0 / jnp.sqrt(jnp.float32(kin))
    wh_t = jax.random.uniform(k1, (kin, hidden_size), jnp.float32, -bound, bound)
    bh = jax.random.uniform(k2, (1, hidden_size), jnp.float32, -bound, bound)
    wo_t = jax.random.uniform(k3, (kin, output_size), jnp.float32, -bound, bound)
    bo = jax.random.uniform(k4, (1, output_size), jnp.float32, -bound, bound)
    return wh_t, bh, wo_t, bo


if __name__ == "__main__":
    batch = 8            # >= 8 keeps the (8,128) vreg sublanes full
    input_size = 16
    hidden_size = 32
    output_size = 8
    seq_len = 16         # two time-chunks of 8

    key = jax.random.PRNGKey(0)
    kx, kp = jax.random.split(key)

    xs = jax.random.normal(kx, (seq_len, batch, input_size), jnp.float32)
    h0 = jnp.zeros((batch, hidden_size), jnp.float32)   # initHidden(), batched

    wh_t, bh, wo_t, bo = init_params(kp, input_size, hidden_size, output_size)
    wx, wh, b = pack_params(wh_t, bh, wo_t, bo,
                            input_size, hidden_size, output_size)

    # Single step (matches RNN.forward exactly) and full fused sequence.
    out1, h1 = rnn_step(xs[0], h0, wx, wh, b,
                        hidden_size=hidden_size, output_size=output_size)
    outs, hN = rnn_sequence(xs, h0, wx, wh, b,
                            hidden_size=hidden_size, output_size=output_size)
    jax.block_until_ready((out1, h1, outs, hN))

    # Reference with the same bf16 quantization of the matmul inputs.
    def ref_step(x, h):
        xb = x.astype(jnp.bfloat16).astype(jnp.float32)
        hb = h.astype(jnp.bfloat16).astype(jnp.float32)
        whf = wh_t.astype(jnp.bfloat16).astype(jnp.float32)
        wof = wo_t.astype(jnp.bfloat16).astype(jnp.float32)
        comb = jnp.concatenate([xb, hb], axis=1)
        hid = jnp.dot(comb, whf, precision=jax.lax.Precision.HIGHEST) + bh
        logits = jnp.dot(comb, wof, precision=jax.lax.Precision.HIGHEST) + bo
        return jax.nn.log_softmax(logits, axis=1), hid

    r_out1, r_h1 = ref_step(xs[0], h0)
    assert jnp.allclose(out1, r_out1, atol=1e-3, rtol=1e-3)
    assert jnp.allclose(h1, r_h1, atol=1e-3, rtol=1e-3)

    # Multi-step reference loop; looser tolerance because the kernel and the
    # reference may accumulate f32 rounding differently over the recurrence.
    h = h0
    for t in range(seq_len):
        r_out, h = ref_step(xs[t], h)
        assert jnp.allclose(outs[t], r_out, atol=2e-2, rtol=2e-2)
    assert jnp.allclose(hN, h, atol=2e-2, rtol=2e-2)

    assert out1.shape == (batch, output_size)
    assert h1.shape == (batch, hidden_size)
    assert outs.shape == (seq_len, batch, output_size)
    assert hN.shape == (batch, hidden_size)

    print("KERNEL_OK")
</pallas_src>

<mosaic_0001>
module attributes {stable_mosaic.version = 11 : i64} {
  func.func @rnn_chunk_kernel(%arg0: i32, %arg1: memref<1x8x16xf32, #tpu.memory_space<vmem>>, %arg2: memref<8x128xf32, #tpu.memory_space<vmem>>, %arg3: memref<16x256xbf16, #tpu.memory_space<vmem>>, %arg4: memref<128x256xbf16, #tpu.memory_space<vmem>>, %arg5: memref<1x256xf32, #tpu.memory_space<vmem>>, %arg6: memref<1x8x128xf32, #tpu.memory_space<vmem>>, %arg7: memref<8x128xf32, #tpu.memory_space<vmem>>, %arg8: memref<8x128xf32, #tpu.memory_space<vmem>>, %arg9: memref<1x8x256xf32, #tpu.memory_space<vmem>>) attributes {dimension_semantics = [#tpu.dimension_semantics<arbitrary>], iteration_bounds = array<i64: 1>, scalar_prefetch = 0 : i64, scratch_operands = 2 : i64, tpu.core_type = #tpu.core_type<tc>, window_params = [{transform_indices = @transform_0, window_bounds = array<i64: 1, 8, 16>}, {pipeline_mode = #tpu.pipeline_mode<synchronous>, transform_indices = @transform_1, window_bounds = array<i64: 8, 128>}, {pipeline_mode = #tpu.pipeline_mode<synchronous>, transform_indices = @transform_2, window_bounds = array<i64: 16, 256>}, {pipeline_mode = #tpu.pipeline_mode<synchronous>, transform_indices = @transform_3, window_bounds = array<i64: 128, 256>}, {pipeline_mode = #tpu.pipeline_mode<synchronous>, transform_indices = @transform_4, window_bounds = array<i64: 1, 256>}, {transform_indices = @transform_5, window_bounds = array<i64: 1, 8, 128>}, {pipeline_mode = #tpu.pipeline_mode<synchronous>, transform_indices = @transform_6, window_bounds = array<i64: 8, 128>}]} {
    %c0_i32 = arith.constant 0 : i32
    %0 = arith.cmpi eq, %arg0, %c0_i32 : i32
    %1 = arith.extui %0 : i1 to i32
    %c0_i32_0 = arith.constant 0 : i32
    %2 = arith.cmpi ne, %1, %c0_i32_0 : i32
    scf.if %2 {
      %c0_26 = arith.constant 0 : index
      %c0_27 = arith.constant 0 : index
      %42 = vector.load %arg2[%c0_26, %c0_27] : memref<8x128xf32, #tpu.memory_space<vmem>>, vector<8x128xf32>
      %c0_28 = arith.constant 0 : index
      %c0_29 = arith.constant 0 : index
      %43 = vector.load %arg8[%c0_28, %c0_29] : memref<8x128xf32, #tpu.memory_space<vmem>>, vector<8x128xf32>
      tpu.vector_store %arg8[%c0_28, %c0_29], %42 {strides = array<i32>} : memref<8x128xf32, #tpu.memory_space<vmem>>, vector<8x128xf32>,
    } else {
    }
    %c0 = arith.constant 0 : index
    %c0_1 = arith.constant 0 : index
    %c0_2 = arith.constant 0 : index
    %3 = vector.load %arg1[%c0, %c0_1, %c0_2] : memref<1x8x16xf32, #tpu.memory_space<vmem>>, vector<1x8x16xf32>
    %4 = arith.truncf %3 : vector<1x8x16xf32> to vector<1x8x16xbf16>
    %5 = vector.shape_cast %4 : vector<1x8x16xbf16> to vector<8x16xbf16>
    %c0_3 = arith.constant 0 : index
    %c0_4 = arith.constant 0 : index
    %6 = vector.load %arg3[%c0_3, %c0_4] : memref<16x256xbf16, #tpu.memory_space<vmem>>, vector<16x256xbf16>
    %cst = arith.constant dense<0.000000e+00> : vector<8x256xf32>
    %7 = tpu.matmul %5, %6, %cst {dimension_numbers = #tpu.dot_dimension_numbers<[1], [0], [0], [1], [0, 0, 1, 1], [], []>} : vector<8x16xbf16>, vector<16x256xbf16>, vector<8x256xf32> -> vector<8x256xf32>
    %8 = vector.shape_cast %7 : vector<8x256xf32> to vector<1x8x256xf32>
    %c0_5 = arith.constant 0 : index
    %c0_6 = arith.constant 0 : index
    %9 = vector.load %arg5[%c0_5, %c0_6] : memref<1x256xf32, #tpu.memory_space<vmem>>, vector<1x256xf32>
    %10 = vector.shape_cast %9 : vector<1x256xf32> to vector<1x1x256xf32>
    %11 = vector.broadcast %10 : vector<1x1x256xf32> to vector<1x8x256xf32>
    %12 = arith.addf %8, %11 : vector<1x8x256xf32>
    %c0_7 = arith.constant 0 : index
    %c0_8 = arith.constant 0 : index
    %c0_9 = arith.constant 0 : index
    %13 = vector.load %arg9[%c0_7, %c0_8, %c0_9] : memref<1x8x256xf32, #tpu.memory_space<vmem>>, vector<1x8x256xf32>
    tpu.vector_store %arg9[%c0_7, %c0_8, %c0_9], %12 {strides = array<i32>} : memref<1x8x256xf32, #tpu.memory_space<vmem>>, vector<1x8x256xf32>,
    %c0_10 = arith.constant 0 : index
    %c0_11 = arith.constant 0 : index
    %14 = vector.load %arg8[%c0_10, %c0_11] : memref<8x128xf32, #tpu.memory_space<vmem>>, vector<8x128xf32>
    %c0_i32_12 = arith.constant 0 : i32
    %15 = arith.truncf %14 : vector<8x128xf32> to vector<8x128xbf16>
    %16 = arith.index_cast %c0_i32_12 : i32 to index
    %c0_13 = arith.constant 0 : index
    %c0_14 = arith.constant 0 : index
    %17 = vector.load %arg9[%16, %c0_13, %c0_14] : memref<1x8x256xf32, #tpu.memory_space<vmem>>, vector<1x8x256xf32>
    %18 = vector.shape_cast %17 : vector<1x8x256xf32> to vector<8x256xf32>
    %c0_15 = arith.constant 0 : index
    %c0_16 = arith.constant 0 : index
    %19 = vector.load %arg4[%c0_15, %c0_16] : memref<128x256xbf16, #tpu.memory_space<vmem>>, vector<128x256xbf16>
    %cst_17 = arith.constant dense<0.000000e+00> : vector<8x256xf32>
    %20 = tpu.matmul %15, %19, %cst_17 {dimension_numbers = #tpu.dot_dimension_numbers<[1], [0], [0], [1], [0, 0, 1, 1], [], []>} : vector<8x128xbf16>, vector<128x256xbf16>, vector<8x256xf32> -> vector<8x256xf32>
    %21 = arith.addf %18, %20 : vector<8x256xf32>
    %22 = vector.extract_strided_slice %21 {offsets = [0, 0], sizes = [8, 128], strides = [1, 1]} : vector<8x256xf32> to vector<8x128xf32>
    %23 = vector.extract_strided_slice %21 {offsets = [0, 128], sizes = [8, 128], strides = [1, 1]} : vector<8x256xf32> to vector<8x128xf32>
    %cst_18 = arith.constant dense<0xFF800000> : vector<8xf32>
    %24 = vector.multi_reduction <maximumf>, %23, %cst_18 [1] : vector<8x128xf32> to vector<8xf32>
    %25 = vector.shape_cast %24 : vector<8xf32> to vector<8x1xf32>
    %26 = vector.broadcast %25 : vector<8x1xf32> to vector<8x128xf32>
    %27 = arith.subf %23, %26 : vector<8x128xf32>
    %28 = math.exp %27 : vector<8x128xf32>
    %cst_19 = arith.constant dense<0.000000e+00> : vector<8xf32>
    %29 = vector.multi_reduction <add>, %28, %cst_19 [1] : vector<8x128xf32> to vector<8xf32>
    %30 = vector.shape_cast %29 : vector<8xf32> to vector<8x1xf32>
    %31 = math.log %30 : vector<8x1xf32>
    %32 = vector.broadcast %31 : vector<8x1xf32> to vector<8x128xf32>
    %33 = arith.subf %27, %32 : vector<8x128xf32>
    %34 = arith.index_cast %c0_i32_12 : i32 to index
    %c0_20 = arith.constant 0 : index
    %c0_21 = arith.constant 0 : index
    %35 = vector.load %arg6[%34, %c0_20, %c0_21] : memref<1x8x128xf32, #tpu.memory_space<vmem>>, vector<1x8x128xf32>
    %36 = vector.shape_cast %35 : vector<1x8x128xf32> to vector<8x128xf32>
    %37 = vector.shape_cast %33 : vector<8x128xf32> to vector<1x8x128xf32>
    tpu.vector_store %arg6[%34, %c0_20, %c0_21], %37 {strides = array<i32>} : memref<1x8x128xf32, #tpu.memory_space<vmem>>, vector<1x8x128xf32>,
    %c1_i32 = arith.constant 1 : i32
    %c0_22 = arith.constant 0 : index
    %c0_23 = arith.constant 0 : index
    %38 = vector.load %arg8[%c0_22, %c0_23] : memref<8x128xf32, #tpu.memory_space<vmem>>, vector<8x128xf32>
    tpu.vector_store %arg8[%c0_22, %c0_23], %22 {strides = array<i32>} : memref<8x128xf32, #tpu.memory_space<vmem>>, vector<8x128xf32>,
    %c0_i32_24 = arith.constant 0 : i32
    %39 = arith.cmpi eq, %arg0, %c0_i32_24 : i32
    %40 = arith.extui %39 : i1 to i32
    %c0_i32_25 = arith.constant 0 : i32
    %41 = arith.cmpi ne, %40, %c0_i32_25 : i32
    scf.if %41 {
      %c0_26 = arith.constant 0 : index
      %c0_27 = arith.constant 0 : index
      %42 = vector.load %arg8[%c0_26, %c0_27] : memref<8x128xf32, #tpu.memory_space<vmem>>, vector<8x128xf32>
      %c0_28 = arith.constant 0 : index
      %c0_29 = arith.constant 0 : index
      %43 = vector.load %arg7[%c0_28, %c0_29] : memref<8x128xf32, #tpu.memory_space<vmem>>, vector<8x128xf32>
      tpu.vector_store %arg7[%c0_28, %c0_29], %42 {strides = array<i32>} : memref<8x128xf32, #tpu.memory_space<vmem>>, vector<8x128xf32>,
    } else {
    }
    return
  }
  func.func @transform_0(%arg0: i32) -> (i32, i32, i32) {
    %c0_i32 = arith.constant 0 : i32
    %c0_i32_0 = arith.constant 0 : i32
    %c0_i32_1 = arith.constant 0 : i32
    return %arg0, %c0_i32, %c0_i32_0 : i32, i32, i32
  }
  func.func @transform_1(%arg0: i32) -> (i32, i32) {
    %c0_i32 = arith.constant 0 : i32
    %c0_i32_0 = arith.constant 0 : i32
    %c0_i32_1 = arith.constant 0 : i32
    return %c0_i32, %c0_i32_0 : i32, i32
  }
  func.func @transform_2(%arg0: i32) -> (i32, i32) {
    %c0_i32 = arith.constant 0 : i32
    %c0_i32_0 = arith.constant 0 : i32
    %c0_i32_1 = arith.constant 0 : i32
    return %c0_i32, %c0_i32_0 : i32, i32
  }
  func.func @transform_3(%arg0: i32) -> (i32, i32) {
    %c0_i32 = arith.constant 0 : i32
    %c0_i32_0 = arith.constant 0 : i32
    %c0_i32_1 = arith.constant 0 : i32
    return %c0_i32, %c0_i32_0 : i32, i32
  }
  func.func @transform_4(%arg0: i32) -> (i32, i32) {
    %c0_i32 = arith.constant 0 : i32
    %c0_i32_0 = arith.constant 0 : i32
    %c0_i32_1 = arith.constant 0 : i32
    return %c0_i32, %c0_i32_0 : i32, i32
  }
  func.func @transform_5(%arg0: i32) -> (i32, i32, i32) {
    %c0_i32 = arith.constant 0 : i32
    %c0_i32_0 = arith.constant 0 : i32
    %c0_i32_1 = arith.constant 0 : i32
    return %arg0, %c0_i32, %c0_i32_0 : i32, i32, i32
  }
  func.func @transform_6(%arg0: i32) -> (i32, i32) {
    %c0_i32 = arith.constant 0 : i32
    %c0_i32_0 = arith.constant 0 : i32
    %c0_i32_1 = arith.constant 0 : i32
    return %c0_i32, %c0_i32_0 : i32, i32
  }
}

</mosaic_0001>

<bundles_post_ra>
// kernel: rnn_sequence.1
= control target key start
LH: loop header
LB: loop body
LE: loop exit
PB: predicated region body
PF: predicated region fallthrough
CT: control target
= control target key end

     0   :  { %12 = vsyncpa [#allocation5], 0  ;;  %s496_s0 = inlined_call_operand.vmem [shape: f32[1,8,16], index: 0, kind: input, shape index: {}]   ;;  %s497_s1 = inlined_call_operand.vmem [shape: f32[8,128], index: 1, kind: input, shape index: {}]   ;;  %s498_s2 = inlined_call_operand.vmem [shape: bf16[16,256], index: 2, kind: input, shape index: {}]   ;;  %s499_s3 = inlined_call_operand.hbm [shape: bf16[128,256], index: 3, kind: input, shape index: {}]   ;;  %s500_s4 = inlined_call_operand.vmem [shape: f32[1,256], index: 4, kind: input, shape index: {}]   ;;  %s501_s5 = inlined_call_operand.hbm [shape: f32[1,8,128], index: 5, kind: output, shape index: {0}]   ;;  %s502_s6 = inlined_call_operand.hbm [shape: f32[8,128], index: 6, kind: output, shape index: {1}]  }
   0x1   :  { %13 = vsyncpa [#allocation6], 0 }
   0x2   :  { %14 = vsyncpa [#allocation9], 0  ;;  %s431_s21 = smov [#allocation4]  }
   0x3   :  { %s26_s22 = sshll.u32 %s431_s21, 4  ;;  %s27_s22 = int_to_ptr.vmem [resolvable:$true] %s26_s22 }
   0x4   :  { %s373_s23 = scalar_lea.vmem %s27_s22, 2048  ;;  %p378_p1 = scmp.lt.s32.totalorder %s27_s22, %s27_s22 }
   0x5   :  { %p374_p0 = scmp.ne.s32.totalorder %s27_s22, %s373_s23  ;;  %p379_p2 = scmp.lt.s32.totalorder %s373_s23, %s373_s23 }
   0x7   :  { %p380_p3 = por %p379_p2, %p378_p1 }
   0x9   :  { %p381_p4 = pnand %p380_p3, %p374_p0 }
   0xb   :  { %384 = shalt.err (!%p381_p4)
}
   0xc   :  { %s432_s24 = smov 128   ;;  %s433_s25 = smov 8  }
   0xd   :  { %32 = dma.hbm_to_vmem [thread:$0]  %s499_s3, 2048, %s27_s22, [#allocation5], %s432_s24, %s432_s24, %s433_s25  }
   0xe   :  { %425 = dma.done.wait [#allocation5], 2048  }
   0xf   :  { %426 = vsyncadd [#allocation5], 4294965248  ;;  %v434_v0 = vmov 0   ;;  %v334_v1 = vld [vmem:[#allocation4 + $0x74] ss:$8 sps:$4 sm:$0xff]   ;;  %v45_v10 = vld [vmem:[%s496_s0] sm:$0xff]  ;;  %v106_v24 = vlaneseq }
  0x10   :  { %95 = vmatprep.mubr.bf16.mxu0 %v434_v0  ;;  %252 = vmatprep.mubr.bf16.mxu1 %v434_v0  ;;  %v336_v2 = vld [vmem:[#allocation4 + $0x70] ss:$8 sps:$4 sm:$0xff]   ;;  %v337_v3 = vld [vmem:[#allocation4 + $0x64] ss:$8 sps:$4 sm:$0xff]   ;;  %v339_v4 = vld [vmem:[#allocation4 + $0x60] ss:$8 sps:$4 sm:$0xff]   ;;  %v46_v11 = vpack.c.bf16 %v45_v10, %v45_v10 }
  0x11   :  { %220 = vmatprep.subr.bf16.mxu1 %v334_v1  ;;  %v340_v5 = vld [vmem:[#allocation4 + $0x54] ss:$8 sps:$4 sm:$0xff]   ;;  %v342_v6 = vld [vmem:[#allocation4 + $0x50] ss:$8 sps:$4 sm:$0xff]   ;;  %v349_v7 = vld [vmem:[%s498_s2 + $0x4] ss:$8 sps:$4 sm:$0xff]  }
  0x12   :  { %221 = vmatpush1.bf16.msra.mxu1 %v336_v2  ;;  %v343_v8 = vld [vmem:[#allocation4 + $0x44] ss:$8 sps:$4 sm:$0xff]   ;;  %v353_v9 = vld [vmem:[%s498_s2] ss:$8 sps:$4 sm:$0xff]   ;;  %77 = vmatprep.subr.bf16.mxu0 %v349_v7  ;;  %vm59_vm0 = vcmask 130048   ;;  %v107_v27 = vshrl.u32 %v106_v24, 7 }
  0x13   :  { %222 = vmatprep.subr.bf16.mxu1 %v337_v3  ;;  %78 = vmatpush1.bf16.msra.mxu0 %v353_v9  ;;  %v345_v12 = vld [vmem:[#allocation4 + $0x40] ss:$8 sps:$4 sm:$0xff]   ;;  %v346_v13 = vld [vmem:[#allocation4 + $0x34] ss:$8 sps:$4 sm:$0xff]   ;;  %v348_v14 = vld [vmem:[#allocation4 + $0x30] ss:$8 sps:$4 sm:$0xff]  }
  0x14   :  { %v351_v15 = vld [vmem:[#allocation4 + $0x24] ss:$8 sps:$4 sm:$0xff]   ;;  %v354_v16 = vld [vmem:[#allocation4 + $0x20] ss:$8 sps:$4 sm:$0xff]   ;;  %v355_v17 = vld [vmem:[#allocation4 + $0x14] ss:$8 sps:$4 sm:$0xff]  }
  0x15   :  { %v357_v18 = vld [vmem:[#allocation4 + $0x10] ss:$8 sps:$4 sm:$0xff]   ;;  %v358_v19 = vld [vmem:[#allocation4 + $0x4] ss:$8 sps:$4 sm:$0xff]   ;;  %v360_v20 = vld [vmem:[#allocation4] ss:$8 sps:$4 sm:$0xff]  }
  0x16   :  { %223 = vmatpush1.bf16.msra.mxu1 %v339_v4  ;;  %311 = vmatmul.mubr.msk.bf16.vlgmr.msra.gmra.mxu0 %vm59_vm0, %v46_v11  ;;  %v43_v21 = vld [vmem:[%s497_s1] sm:$0xff]  ;;  %v108_v29 = vsub.s32 0, %v107_v27  ;;  %v112_v32 = vsub.s32 1, %v107_v27  ;;  %s435_s1 = smov [#allocation8]  }
  0x17   :  { %224 = vmatprep.subr.bf16.mxu1 %v340_v5  ;;  %v121_v22 = vpack.c.bf16 %v43_v21, %v43_v21  ;;  %v104_v30 = vld [vmem:[%s500_s4] sm:$0x3]  ;;  %s296_s4 = sshll.u32 %s435_s1, 4  ;;  %s297_s4 = int_to_ptr.vmem [resolvable:$true] %s296_s4 }
  0x18   :  { %v109_v31 = vrot.slane %v104_v30, %v108_v29  ;;  %v113_v34 = vrot.slane %v104_v30, %v112_v32  ;;  %s385_s11 = scalar_lea.vmem %s297_s4, 128  ;;  %p390_p6 = scmp.lt.s32.totalorder %s297_s4, %s297_s4 }
  0x19   :  { %p386_p5 = scmp.ne.s32.totalorder %s297_s4, %s385_s11  ;;  %p391_p7 = scmp.lt.s32.totalorder %s385_s11, %s385_s11 }
  0x1a   :  { %225 = vmatpush1.bf16.msra.mxu1 %v342_v6 }
  0x1b   :  { %226 = vmatprep.subr.bf16.mxu1 %v343_v8  ;;  %p392_p8 = por %p391_p7, %p390_p6 }
  0x1d   :  { %p393_p9 = pnand %p392_p8, %p386_p5 }
  0x1e   :  { %227 = vmatpush1.bf16.msra.mxu1 %v345_v12 }
  0x1f   :  { %228 = vmatprep.subr.bf16.mxu1 %v346_v13 }
  0x22   :  { %229 = vmatpush1.bf16.msra.mxu1 %v348_v14 }
  0x23   :  { %230 = vmatprep.subr.bf16.mxu1 %v351_v15 }
  0x26   :  { %231 = vmatpush1.bf16.msra.mxu1 %v354_v16 }
  0x27   :  { %232 = vmatprep.subr.bf16.mxu1 %v355_v17 }
  0x2a   :  { %233 = vmatpush1.bf16.msra.mxu1 %v357_v18 }
  0x2b   :  { %234 = vmatprep.subr.bf16.mxu1 %v358_v19 }
  0x2e   :  { %235 = vmatpush1.bf16.msra.mxu1 %v360_v20 }
  0x31   :  { %253 = vmatmul.mubr.bf16.vlgmr.msra.gmra.mxu1 %v121_v22 }
  0xd6   :  { %v97_v23 = vpop.f32.mrf.mxu0 }
  0xd7   :  { %v116_v33 = vadd.f32 %v109_v31, %v97_v23 }
  0xd8   :  { %v99_v25 = vpop.f32.mrf.mxu0 }
  0xd9   :  { %v117_v36 = vadd.f32 %v113_v34, %v99_v25 }
  0xda   :  { %v101_v26 = vpop.f32.mrf.mxu0 }
  0xdc   :  { %v102_v28 = vpop.f32.mrf.mxu0 }
  0xf1   :  { %v254_v35 = vpop.f32.mrf.mxu1 }
  0xf2   :  { %v261_v37 = vadd.f32 %v254_v35, %v116_v33 }
  0xf3   :  { %v256_v38 = vpop.f32.mrf.mxu1 }
  0xf4   :  { %279 = vst [vmem:[#allocation8] sm:$0xff] %v261_v37  ;;  %v262_v39 = vadd.f32 %v256_v38, %v117_v36 }
  0xf5   :  { %v258_v40 = vpop.f32.mrf.mxu1 }
  0xf6   :  { %263 = vmax.xlane.f32.xlu0 %v262_v39 }
  0xf7   :  { %v259_v41 = vpop.f32.mrf.mxu1 }
 0x17f   :  { %v264_v42 = vpop.xlane.xlu0 %263 }
 0x180   :  { %v265_v43 = vsub.f32 %v262_v39, %v264_v42 }
 0x182   :  { %v266_v44 = vmul.f32 1.442695, %v265_v43 }
 0x184   :  { %361 = vpow2.f32 %v266_v44 }
 0x191   :  { %v362_v45 = vpop.eup %361 }
 0x192   :  { %268 = vadd.xlane.f32.xlu0 %v362_v45 }
 0x193   :  { %396 = shalt.err (!%p393_p9)
}
 0x194   :  { %299 = dma.vmem_to_hbm [thread:$0]  %s297_s4, 128, %s502_s6, [#allocation9]  }
 0x195   :  { %s436_s14 = smov [#allocation7]  }
 0x196   :  { %s286_s15 = sshll.u32 %s436_s14, 4  ;;  %s287_s15 = int_to_ptr.vmem [resolvable:$true] %s286_s15 }
 0x197   :  { %s405_s16 = scalar_lea.vmem %s287_s15, 128  ;;  %p410_p11 = scmp.lt.s32.totalorder %s287_s15, %s287_s15 }
 0x198   :  { %p406_p10 = scmp.ne.s32.totalorder %s287_s15, %s405_s16  ;;  %p411_p12 = scmp.lt.s32.totalorder %s405_s16, %s405_s16 }
 0x19a   :  { %p412_p13 = por %p411_p12, %p410_p11 }
 0x19c   :  { %p413_p0 = pnand %p412_p13, %p406_p10 }
 0x21b   :  { %v269_v46 = vpop.xlane.xlu0 %268 }
 0x21c   :  { %363 = vlog2.f32 %v269_v46 }
 0x229   :  { %v364_v47 = vpop.eup %363 }
 0x22a   :  { %v271_v48 = vmul.f32 0.6931472, %v364_v47 }
 0x22c   :  { %v272_v49 = vsub.f32 %v265_v43, %v271_v48 }
 0x22e   :  { %273 = vst [vmem:[#allocation7] sm:$0xff] %v272_v49 }
 0x22f   :  { %416 = shalt.err (!%p413_p0)
}
 0x230   :  { %289 = dma.vmem_to_hbm [thread:$0]  %s287_s15, 128, %s501_s5, [#allocation6]  }
 0x231   :  { %427 = dma.done.wait [#allocation6], 128  }
 0x232   :  { %428 = vsyncadd [#allocation6], 4294967168 }
 0x233   :  { %429 = dma.done.wait [#allocation9], 128  }
 0x234   :  { %430 = vsyncadd [#allocation9], 4294967168 }
 0x235   :  { %306 = vsyncpa [#allocation5], 1 }
 0x236   :  { %307 = vsyncpa [#allocation6], 1 }
 0x237   :  { %308 = vsyncpa [#allocation9], 1 }

</bundles_post_ra>
